<compile_context>
chip_gen: v6e
topology: v6e:2x2x1
jax: 0.10.0
libtpu: 0.0.40
codegen_flags: <defaults>
</compile_context>

<pallas_src>
import functools

import jax
import jax.numpy as jnp
from jax.experimental import pallas as pl
from jax.experimental.pallas import tpu as pltpu


_MIB = 1024 * 1024
_STREAM_BLOCK_BYTES = 6 * _MIB      # ~6 MiB streaming blocks (roofline plateau)
_STREAM_VMEM_LIMIT = 32 * _MIB      # scoped-VMEM limit for the streaming passes


def _vmem_capacity_bytes():
    """Per-TensorCore VMEM capacity; conservative (v7x) fallback if unknown."""
    try:
        return int(pltpu.get_tpu_info().vmem_capacity_bytes)
    except Exception:
        return 64 * _MIB


def _num_tensorcores():
    # v7x has 2 TensorCores per chip (each with 64 MiB VMEM); v5e/v6e expose a
    # single (mega)core with 128 MiB.  There is no stable public core-count
    # field, so use per-core VMEM capacity as a proxy.
    return 2 if _vmem_capacity_bytes() <= 64 * _MIB else 1


# ----------------------------- fused kernel ---------------------------------
def _se_fused_kernel(x_ref, wsq_ref, bsq_ref, wex_ref, bex_ref, o_ref, *, inv_hw):
    # x_ref / o_ref: (1, C, HW) block for one batch element; HW on the lane axis.
    # Squeeze: global average pool == lane-axis reduction, accumulated in f32.
    pooled = jnp.sum(x_ref[...].astype(jnp.float32), axis=2) * inv_hw          # (1, C)

    # Both 1x1 convs are M=1 matmuls; keep them on the VPU/XLU as
    # broadcast-multiply + reduce instead of paying MXU push/pop latency.
    h = jnp.sum(pooled * wsq_ref[...], axis=1, keepdims=True) + bsq_ref[...]   # (reduc, 1)
    h = jnp.maximum(h, 0.0)
    logits = jnp.sum(h * wex_ref[...], axis=0, keepdims=True) + bex_ref[...]   # (1, C)
    attn = jax.nn.sigmoid(logits)                                              # (1, C)

    # Excite: re-read x from VMEM (already resident) and scale in the input dtype.
    o_ref[...] = x_ref[...] * attn.astype(o_ref.dtype)[:, :, None]


# -------------------------- two-pass fallback kernels ------------------------
def _pool_kernel_c(x_ref, mean_ref, *, inv_hw):
    # C-tiled pool: x_ref (1, c_tile, HW) holds FULL HW, so the mean for these
    # channels is final -- no accumulator, no "arbitrary" axis, no masking.
    # (Overhang sublanes of a ragged boundary block hold unspecified data but
    # their results are never written back to the valid output region.)
    mean_ref[...] = (
        jnp.sum(x_ref[...].astype(jnp.float32), axis=2, keepdims=True) * inv_hw)


def _pool_kernel_hw(x_ref, sum_ref, *, hw, hw_tile):
    # HW-tiled pool (last resort): (1, C, hw_tile) blocks, f32 accumulator
    # resident across the "arbitrary" HW-tile axis.
    hw_i = pl.program_id(1)

    @pl.when(hw_i == 0)
    def _():
        sum_ref[...] = jnp.zeros_like(sum_ref)

    x = x_ref[...].astype(jnp.float32)                      # (1, C, hw_tile)
    if hw % hw_tile == 0:
        sum_ref[...] += jnp.sum(x, axis=2, keepdims=True)
    else:
        # Ragged last tile: gate the iota/compare/select off the hot path.
        is_last = hw_i == pl.num_programs(1) - 1

        @pl.when(jnp.logical_not(is_last))
        def _():
            sum_ref[...] += jnp.sum(x, axis=2, keepdims=True)

        @pl.when(is_last)
        def _():
            lane = jax.lax.broadcasted_iota(jnp.int32, x.shape, 2)
            xm = jnp.where(hw_i * hw_tile + lane < hw, x, 0.0)
            sum_ref[...] += jnp.sum(xm, axis=2, keepdims=True)


def _scale_kernel(x_ref, attn_ref, o_ref):
    # Per-channel scale broadcast along the lane axis, in the input dtype.
    # NOTE: ragged boundary blocks compute on unspecified overhang data; those
    # lanes/sublanes are never written back, so do NOT "fix" this into a
    # masked (slower) store.
    o_ref[...] = x_ref[...] * attn_ref[...].astype(o_ref.dtype)


# --------------------------------- wrapper -----------------------------------
def se_block(x_nchw, w_sq, b_sq, w_ex, b_ex, *, force_two_pass=False):
    """SEBlock forward.

    Args:
      x_nchw: (N, C, H, W) input, matching the PyTorch NCHW convention.
      w_sq:   (C, reduc)  squeeze weights (PyTorch conv weight (reduc,C,1,1)^T).
      b_sq:   (reduc,)    squeeze bias.
      w_ex:   (reduc, C)  excite weights (PyTorch conv weight (C,reduc,1,1)^T).
      b_ex:   (C,)        excite bias.
      force_two_pass: force the streaming two-pass path (for testing).
    Returns:
      (N, C, H, W) output, same dtype as x_nchw.
    """
    N, C, H, W = x_nchw.shape
    reduc = w_sq.shape[1]
    HW = H * W
    itemsize = jnp.dtype(x_nchw.dtype).itemsize

    # Native layout: (N, C, HW). A reshape is free -- no transpose passes.
    x = x_nchw.reshape(N, C, HW)

    # Tiny one-time parameter reshapes into the layouts the kernels want.
    w_sq_t = jnp.transpose(w_sq).astype(jnp.float32)        # (reduc, C)
    w_ex_f = w_ex.astype(jnp.float32)                       # (reduc, C)
    b_sq2 = b_sq.astype(jnp.float32).reshape(reduc, 1)
    b_ex2 = b_ex.astype(jnp.float32).reshape(1, C)

    # Generation-aware VMEM budgets.
    vmem_cap = _vmem_capacity_bytes()
    fused_budget = int(0.6 * vmem_cap)     # v5e/v6e ~77 MiB, v7x ~38 MiB
    fused_limit = int(0.75 * vmem_cap)     # v5e/v6e ~96 MiB, v7x ~48 MiB
    num_tc = _num_tensorcores()

    # Fused-path VMEM estimate: double-buffered in + out blocks + f32 params,
    # plus one f32 block of insurance for sub-32-bit inputs in case the upcast
    # feeding the pool reduction materializes.
    # TODO(synk): verify with pl.lower_as_mlir that the bf16->f32 upcast fuses
    # into the lane reduction; if it provably fuses, drop `upcast_bytes`.
    upcast_bytes = 0 if itemsize >= 4 else 4 * C * HW
    fused_vmem = (2 * 2 * C * HW * itemsize + upcast_bytes
                  + 2 * 4 * (2 * reduc * C + reduc + C))

    # v7x: grid=(N,) with N < num_tc pins this memory-bound pass to one
    # TensorCore; the two-pass path's fully parallel 2-D grid uses both TCs,
    # netting a win for large single-image blocks even at 1.5x the HBM bytes.
    per_batch_bytes = C * HW * itemsize
    reroute_for_cores = (num_tc > 1 and N < num_tc
                         and per_batch_bytes > _STREAM_BLOCK_BYTES)

    if (not force_two_pass and fused_vmem <= fused_budget
            and not reroute_for_cores):
        out = pl.pallas_call(
            functools.partial(_se_fused_kernel, inv_hw=1.0 / HW),
            out_shape=jax.ShapeDtypeStruct((N, C, HW), x.dtype),
            grid_spec=pltpu.PrefetchScalarGridSpec(
                num_scalar_prefetch=0,
                grid=(N,),
                in_specs=[
                    pl.BlockSpec((1, C, HW), lambda n: (n, 0, 0)),   # x
                    pl.BlockSpec((reduc, C), lambda n: (0, 0)),      # w_sq^T
                    pl.BlockSpec((reduc, 1), lambda n: (0, 0)),      # b_sq
                    pl.BlockSpec((reduc, C), lambda n: (0, 0)),      # w_ex
                    pl.BlockSpec((1, C), lambda n: (0, 0)),          # b_ex
                ],
                out_specs=pl.BlockSpec((1, C, HW), lambda n: (n, 0, 0)),
            ),
            compiler_params=pltpu.CompilerParams(
                dimension_semantics=("parallel",),
                vmem_limit_bytes=fused_limit),
        )(x, w_sq_t, b_sq2, w_ex_f, b_ex2)
        return out.reshape(N, C, H, W)

    # ---------------- Two-pass streaming fallback (large blocks) -------------
    # Prefer C (sublane) tiling with FULL HW per block: one fully contiguous
    # DMA per block, no accumulator/masking in the pool pass, fully parallel
    # grid.  Only fall back to HW tiling when even one sublane pack of
    # full-HW rows exceeds the per-block budget.
    sub_pack = max(8, (8 * 4) // itemsize)          # 8 f32 / 16 bf16 / 32 int8
    row_bytes = HW * itemsize
    max_c = _STREAM_BLOCK_BYTES // max(1, row_bytes)
    if max_c >= C:
        c_tile = C
    elif max_c >= sub_pack:
        c_tile = (max_c // sub_pack) * sub_pack
    else:
        c_tile = 0
    use_c_tiling = c_tile > 0

    if use_c_tiling:
        n_c = pl.cdiv(C, c_tile)
        pooled = pl.pallas_call(
            functools.partial(_pool_kernel_c, inv_hw=1.0 / HW),
            out_shape=jax.ShapeDtypeStruct((N, C, 1), jnp.float32),
            grid_spec=pltpu.PrefetchScalarGridSpec(
                num_scalar_prefetch=0,
                grid=(N, n_c),
                in_specs=[pl.BlockSpec((1, c_tile, HW), lambda n, c: (n, c, 0))],
                out_specs=pl.BlockSpec((1, c_tile, 1), lambda n, c: (n, c, 0)),
            ),
            compiler_params=pltpu.CompilerParams(
                dimension_semantics=("parallel", "parallel"),
                vmem_limit_bytes=_STREAM_VMEM_LIMIT),
        )(x)[:, :, 0]                                                   # (N, C)
    else:
        hw_tile = max(128, (_STREAM_BLOCK_BYTES // (C * itemsize)) // 128 * 128)
        hw_tile = min(hw_tile, pl.cdiv(HW, 128) * 128)
        n_hw = pl.cdiv(HW, hw_tile)
        pooled_sum = pl.pallas_call(
            functools.partial(_pool_kernel_hw, hw=HW, hw_tile=hw_tile),
            out_shape=jax.ShapeDtypeStruct((N, C, 1), jnp.float32),
            grid_spec=pltpu.PrefetchScalarGridSpec(
                num_scalar_prefetch=0,
                grid=(N, n_hw),
                in_specs=[pl.BlockSpec((1, C, hw_tile), lambda n, t: (n, 0, t))],
                out_specs=pl.BlockSpec((1, C, 1), lambda n, t: (n, 0, 0)),
            ),
            compiler_params=pltpu.CompilerParams(
                dimension_semantics=("parallel", "arbitrary"),
                vmem_limit_bytes=_STREAM_VMEM_LIMIT),
        )(x)
        pooled = pooled_sum[:, :, 0] * (1.0 / HW)                       # (N, C)

    # Squeeze/excite on the pooled (N, C) vector: a handful of kFLOPs, batched
    # over all N in plain JAX (M=1 matmuls on the MXU would just waste it).
    h = jnp.maximum(pooled @ w_sq.astype(jnp.float32) + b_sq.astype(jnp.float32), 0.0)
    attn = jax.nn.sigmoid(h @ w_ex_f + b_ex.astype(jnp.float32))        # (N, C)
    attn = attn.reshape(N, C, 1)

    # Pass 2: stream x and apply the per-channel scale; both grid axes parallel
    # so the memory-bound pass shards across both v7x TensorCores even for N=1.
    if use_c_tiling:
        grid = (N, pl.cdiv(C, c_tile))
        x_spec = pl.BlockSpec((1, c_tile, HW), lambda n, c: (n, c, 0))
        a_spec = pl.BlockSpec((1, c_tile, 1), lambda n, c: (n, c, 0))
    else:
        grid = (N, n_hw)
        x_spec = pl.BlockSpec((1, C, hw_tile), lambda n, t: (n, 0, t))
        a_spec = pl.BlockSpec((1, C, 1), lambda n, t: (n, 0, 0))

    out = pl.pallas_call(
        _scale_kernel,
        out_shape=jax.ShapeDtypeStruct((N, C, HW), x.dtype),
        grid_spec=pltpu.PrefetchScalarGridSpec(
            num_scalar_prefetch=0,
            grid=grid,
            in_specs=[x_spec, a_spec],
            out_specs=x_spec,
        ),
        compiler_params=pltpu.CompilerParams(
            dimension_semantics=("parallel", "parallel"),
            vmem_limit_bytes=_STREAM_VMEM_LIMIT),
    )(x, attn)
    return out.reshape(N, C, H, W)


def se_block_ref(x_nchw, w_sq, b_sq, w_ex, b_ex):
    """Pure-JAX reference (matches PyTorch SEBlock.forward)."""
    pooled = jnp.mean(x_nchw.astype(jnp.float32), axis=(2, 3))        # (N, C)
    h = jnp.maximum(pooled @ w_sq + b_sq, 0.0)                        # (N, reduc)
    attn = jax.nn.sigmoid(h @ w_ex + b_ex)                            # (N, C)
    return (x_nchw.astype(jnp.float32) * attn[:, :, None, None]).astype(x_nchw.dtype)


if __name__ == "__main__":
    # Small shapes consistent with the module: reduction=16 needs C >= 16.
    N, C, H, W = 2, 32, 16, 16
    reduction = 16
    reduc = C // reduction  # = 2

    key = jax.random.PRNGKey(0)
    kx, kw1, kb1, kw2, kb2 = jax.random.split(key, 5)

    x = jax.random.normal(kx, (N, C, H, W), dtype=jnp.float32)

    # Deterministic parameter init (kaiming-like scale for squeeze).
    w_sq = jax.random.normal(kw1, (C, reduc), dtype=jnp.float32) * (2.0 / C) ** 0.5
    b_sq = jax.random.normal(kb1, (reduc,), dtype=jnp.float32) * 0.1
    # TODO(synk): module uses constant_init(excite, 0); random init used here so
    # the excite path is actually exercised.
    w_ex = jax.random.normal(kw2, (reduc, C), dtype=jnp.float32) * (2.0 / reduc) ** 0.5
    b_ex = jax.random.normal(kb2, (C,), dtype=jnp.float32) * 0.1

    ref = se_block_ref(x, w_sq, b_sq, w_ex, b_ex)

    # Fused single-pass path (used for shapes that fit the VMEM budget).
    out_fused = jax.block_until_ready(se_block(x, w_sq, b_sq, w_ex, b_ex))
    assert out_fused.shape == (N, C, H, W)
    assert jnp.allclose(out_fused, ref, atol=1e-5, rtol=1e-5), "fused path mismatch"

    # Two-pass streaming fallback (exercised here for correctness).
    out_2p = jax.block_until_ready(
        se_block(x, w_sq, b_sq, w_ex, b_ex, force_two_pass=True))
    assert jnp.allclose(out_2p, ref, atol=1e-5, rtol=1e-5), "two-pass path mismatch"

    print("KERNEL_OK")
</pallas_src>

<mosaic_0001>
module attributes {stable_mosaic.version = 11 : i64} {
  func.func @_se_fused_kernel(%arg0: i32, %arg1: memref<1x32x256xf32, #tpu.memory_space<vmem>>, %arg2: memref<2x32xf32, #tpu.memory_space<vmem>>, %arg3: memref<2x1xf32, #tpu.memory_space<vmem>>, %arg4: memref<2x32xf32, #tpu.memory_space<vmem>>, %arg5: memref<1x32xf32, #tpu.memory_space<vmem>>, %arg6: memref<1x32x256xf32, #tpu.memory_space<vmem>>) attributes {dimension_semantics = [#tpu.dimension_semantics<parallel>], iteration_bounds = array<i64: 2>, scalar_prefetch = 0 : i64, scratch_operands = 0 : i64, tpu.core_type = #tpu.core_type<tc>, window_params = [{transform_indices = @transform_0, window_bounds = array<i64: 1, 32, 256>}, {pipeline_mode = #tpu.pipeline_mode<synchronous>, transform_indices = @transform_1, window_bounds = array<i64: 2, 32>}, {pipeline_mode = #tpu.pipeline_mode<synchronous>, transform_indices = @transform_2, window_bounds = array<i64: 2, 1>}, {pipeline_mode = #tpu.pipeline_mode<synchronous>, transform_indices = @transform_3, window_bounds = array<i64: 2, 32>}, {pipeline_mode = #tpu.pipeline_mode<synchronous>, transform_indices = @transform_4, window_bounds = array<i64: 1, 32>}, {transform_indices = @transform_5, window_bounds = array<i64: 1, 32, 256>}]} {
    %c0 = arith.constant 0 : index
    %c0_0 = arith.constant 0 : index
    %c0_1 = arith.constant 0 : index
    %0 = vector.load %arg1[%c0, %c0_0, %c0_1] : memref<1x32x256xf32, #tpu.memory_space<vmem>>, vector<1x32x256xf32>
    %cst = arith.constant dense<0.000000e+00> : vector<1x32xf32>
    %1 = vector.multi_reduction <add>, %0, %cst [2] : vector<1x32x256xf32> to vector<1x32xf32>
    %cst_2 = arith.constant 3.906250e-03 : f32
    %2 = vector.broadcast %cst_2 : f32 to vector<1x32xf32>
    %3 = arith.mulf %1, %2 : vector<1x32xf32>
    %c0_3 = arith.constant 0 : index
    %c0_4 = arith.constant 0 : index
    %4 = vector.load %arg2[%c0_3, %c0_4] : memref<2x32xf32, #tpu.memory_space<vmem>>, vector<2x32xf32>
    %5 = vector.broadcast %3 : vector<1x32xf32> to vector<2x32xf32>
    %6 = arith.mulf %5, %4 : vector<2x32xf32>
    %cst_5 = arith.constant dense<0.000000e+00> : vector<2xf32>
    %7 = vector.multi_reduction <add>, %6, %cst_5 [1] : vector<2x32xf32> to vector<2xf32>
    %8 = vector.shape_cast %7 : vector<2xf32> to vector<2x1xf32>
    %c0_6 = arith.constant 0 : index
    %c0_7 = arith.constant 0 : index
    %9 = vector.load %arg3[%c0_6, %c0_7] : memref<2x1xf32, #tpu.memory_space<vmem>>, vector<2x1xf32>
    %10 = arith.addf %8, %9 : vector<2x1xf32>
    %cst_8 = arith.constant 0.000000e+00 : f32
    %11 = vector.broadcast %cst_8 : f32 to vector<2x1xf32>
    %12 = arith.maximumf %10, %11 : vector<2x1xf32>
    %c0_9 = arith.constant 0 : index
    %c0_10 = arith.constant 0 : index
    %13 = vector.load %arg4[%c0_9, %c0_10] : memref<2x32xf32, #tpu.memory_space<vmem>>, vector<2x32xf32>
    %14 = vector.broadcast %12 : vector<2x1xf32> to vector<2x32xf32>
    %15 = arith.mulf %14, %13 : vector<2x32xf32>
    %cst_11 = arith.constant dense<0.000000e+00> : vector<32xf32>
    %16 = vector.multi_reduction <add>, %15, %cst_11 [0] : vector<2x32xf32> to vector<32xf32>
    %17 = vector.shape_cast %16 : vector<32xf32> to vector<1x32xf32>
    %c0_12 = arith.constant 0 : index
    %c0_13 = arith.constant 0 : index
    %18 = vector.load %arg5[%c0_12, %c0_13] : memref<1x32xf32, #tpu.memory_space<vmem>>, vector<1x32xf32>
    %19 = arith.addf %17, %18 : vector<1x32xf32>
    %20 = arith.negf %19 : vector<1x32xf32>
    %21 = math.exp %20 : vector<1x32xf32>
    %cst_14 = arith.constant 1.000000e+00 : f32
    %22 = vector.broadcast %cst_14 : f32 to vector<1x32xf32>
    %23 = arith.addf %22, %21 : vector<1x32xf32>
    %24 = arith.divf %22, %23 : vector<1x32xf32>
    %c0_15 = arith.constant 0 : index
    %c0_16 = arith.constant 0 : index
    %c0_17 = arith.constant 0 : index
    %25 = vector.load %arg1[%c0_15, %c0_16, %c0_17] : memref<1x32x256xf32, #tpu.memory_space<vmem>>, vector<1x32x256xf32>
    %26 = vector.shape_cast %24 : vector<1x32xf32> to vector<1x32x1xf32>
    %27 = vector.broadcast %26 : vector<1x32x1xf32> to vector<1x32x256xf32>
    %28 = arith.mulf %25, %27 : vector<1x32x256xf32>
    %c0_18 = arith.constant 0 : index
    %c0_19 = arith.constant 0 : index
    %c0_20 = arith.constant 0 : index
    %29 = vector.load %arg6[%c0_18, %c0_19, %c0_20] : memref<1x32x256xf32, #tpu.memory_space<vmem>>, vector<1x32x256xf32>
    tpu.vector_store %arg6[%c0_18, %c0_19, %c0_20], %28 {strides = array<i32>} : memref<1x32x256xf32, #tpu.memory_space<vmem>>, vector<1x32x256xf32>,
    return
  }
  func.func @transform_0(%arg0: i32) -> (i32, i32, i32) {
    %c0_i32 = arith.constant 0 : i32
    %c0_i32_0 = arith.constant 0 : i32
    %c0_i32_1 = arith.constant 0 : i32
    return %arg0, %c0_i32, %c0_i32_0 : i32, i32, i32
  }
  func.func @transform_1(%arg0: i32) -> (i32, i32) {
    %c0_i32 = arith.constant 0 : i32
    %c0_i32_0 = arith.constant 0 : i32
    %c0_i32_1 = arith.constant 0 : i32
    return %c0_i32, %c0_i32_0 : i32, i32
  }
  func.func @transform_2(%arg0: i32) -> (i32, i32) {
    %c0_i32 = arith.constant 0 : i32
    %c0_i32_0 = arith.constant 0 : i32
    %c0_i32_1 = arith.constant 0 : i32
    return %c0_i32, %c0_i32_0 : i32, i32
  }
  func.func @transform_3(%arg0: i32) -> (i32, i32) {
    %c0_i32 = arith.constant 0 : i32
    %c0_i32_0 = arith.constant 0 : i32
    %c0_i32_1 = arith.constant 0 : i32
    return %c0_i32, %c0_i32_0 : i32, i32
  }
  func.func @transform_4(%arg0: i32) -> (i32, i32) {
    %c0_i32 = arith.constant 0 : i32
    %c0_i32_0 = arith.constant 0 : i32
    %c0_i32_1 = arith.constant 0 : i32
    return %c0_i32, %c0_i32_0 : i32, i32
  }
  func.func @transform_5(%arg0: i32) -> (i32, i32, i32) {
    %c0_i32 = arith.constant 0 : i32
    %c0_i32_0 = arith.constant 0 : i32
    %c0_i32_1 = arith.constant 0 : i32
    return %arg0, %c0_i32, %c0_i32_0 : i32, i32, i32
  }
}

</mosaic_0001>

<bundles_post_ra>
// kernel: tpu_custom_call.1
= control target key start
LH: loop header
LB: loop body
LE: loop exit
PB: predicated region body
PF: predicated region fallthrough
CT: control target
= control target key end

     0   :  { %10 = vsyncpa [#allocation3], 0  ;;  %s974_s0 = inlined_call_operand.hbm [shape: f32[2,32,256], index: 0, kind: input, shape index: {}]   ;;  %s975_s1 = inlined_call_operand.vmem [shape: f32[2,32], index: 1, kind: input, shape index: {}]   ;;  %s976_s2 = inlined_call_operand.vmem [shape: f32[2,1], index: 2, kind: input, shape index: {}]   ;;  %s977_s3 = inlined_call_operand.vmem [shape: f32[2,32], index: 3, kind: input, shape index: {}]   ;;  %s978_s4 = inlined_call_operand.vmem [shape: f32[1,32], index: 4, kind: input, shape index: {}]   ;;  %s979_s5 = inlined_call_operand.hbm [shape: f32[2,32,256], index: 5, kind: output, shape index: {}]  }
   0x1   :  { %12 = vsyncpa [#allocation3 + $0x1], 0 }
   0x2   :  { %13 = vsyncpa [#allocation4], 0 }
   0x3   :  { %15 = vsyncpa [#allocation4 + $0x1], 0  ;;  %s760_s18 = smov 0   ;;  %s762_s19 = smov 0  }
   0x4   :  { %s764_s20 = smov 0   ;;  %s766_s21 = smov 0  }
   0x5 LB: > { %s781_s22 = sadd.s32 4294967295, %s721_s21   ;;  %s555_s23 = sadd.s32 4294967294, %s721_s21   ;;  %s721_s21 = sphi %s766_s21, %s994_s21   ;;  %s717_s20 = sphi %s764_s20, %s993_s20   ;;  %s713_s19 = sphi %s762_s19, %s992_s19   ;;  %s709_s18 = sphi %s760_s18, %s991_s18  }
   0x6   : > { %s785_s24 = sadd.s32 1, %s721_s21   ;;  %s28_s25 = sadd.s32 1, %s717_s20 }
   0x7   : > { %s25_s26 = ssub.s32 %s721_s21, %s785_s24  ;;  %p35_p0 = scmp.ne.s32.totalorder %s717_s20, %s713_s19 }
   0x8   : > { %p26_p1 = scmp.eq.s32.totalorder %s25_s26, 0  ;;  %p36_p2 = scmp.eq.s32.totalorder %s721_s21, 0 }
   0x9   : > { %p41_p3 = scmp.ne.s32.totalorder %s713_s19, %s709_s18  ;;  %p42_p4 = scmp.eq.s32.totalorder %s781_s22, 0 }
   0xa   : > { %s797_s27 = scalar_select %p26_p1, %s717_s20, %s28_s25  }
   0xb   : > { %p799_p5 = por %p36_p2, %p35_p0  ;;  %p803_p6 = por %p42_p4, %p41_p3 }
   0xc   : > { %p149_p7 = scmp.eq.s32.totalorder %s781_s22, 1  ;;  %p155_p8 = scmp.eq.s32.totalorder %s555_s23, 1 }
   0xd   : > { %s983_s29 = scalar_select %p803_p6, 1, 0 }
   0xe   : > { %p584_p10 = scmp.lt.s32.totalorder %s721_s21, 2  ;;  %p810_p11 = por %p149_p7, %p35_p0 }
   0xf   : > { %p814_p12 = por %p155_p8, %p41_p3  ;;  %s187_s7 = sand.u32 1, %s717_s20  }
  0x10   : > { %s984_s30 = scalar_select %p810_p11, 1, 0 }
  0x11   : > { %s985_s6 = scalar_select %p814_p12, 1, 0 }
  0x12   : > { %s570_s8 = sshll.u32 %s721_s21, 10  ;;  %s558_s9 = sshll.u32 %s187_s7, 6 }
  0x13   : > { %s823_s12 = scalar_lea.hbm %s974_s0, %s570_s8  ;;  %s191_s13 = scalar_lea.vmem [#allocation2], %s558_s9 }
  0x14   : > { %s198_s14 = sshll.u32 %s191_s13, 4  ;;  %p827_p13 = pnand %p584_p10, %p799_p5  ;;  %s831_s14 = int_to_ptr.vmem [resolvable:$true] %s198_s14 }
  0x15   : > { %s833_s16 = scalar_lea.sflag [#allocation3], %s187_s7  ;;  %s629_s17 = scalar_lea.hbm %s823_s12, 1024 }
  0x16   : > { %p630_p0 = scmp.ne.s32.totalorder %s823_s12, %s629_s17  ;;  %p631_p1 = pneg %p827_p13 }
  0x17   : > { %s634_s26 = scalar_lea.hbm %s974_s0, 2048  ;;  %p635_p4 = scmp.lt.s32.totalorder %s823_s12, %s974_s0 }
  0x18   : > { %p632_p2 = pnand %p631_p1, %p630_p0  ;;  %p636_p5 = scmp.lt.s32.totalorder %s634_s26, %s629_s17 }
  0x1a   : > { %p633_p3 = pneg %p632_p2  ;;  %p637_p7 = por %p636_p5, %p635_p4 }
  0x1c   : > { %p638_p8 = pnand %p637_p7, %p633_p3 }
  0x1e   : > { %641 = shalt.err (!%p638_p8)
}
  0x1f   : > { %s642_s7 = scalar_lea.vmem %s831_s14, 1024  ;;  %s723_s9 = smov [#allocation2]  }
  0x20   : > { %p643_p10 = scmp.ne.s32.totalorder %s831_s14, %s642_s7  ;;  %s647_s10 = sshll.u32 %s723_s9, 4  ;;  %s648_s10 = int_to_ptr.vmem [resolvable:$false] %s647_s10 }
  0x21   : > { %s649_s11 = scalar_lea.vmem %s648_s10, 2048  ;;  %p650_p2 = scmp.lt.s32.totalorder %s831_s14, %s648_s10 }
  0x22   : > { %p645_p9 = pnand %p643_p10, %p631_p1  ;;  %p651_p12 = scmp.lt.s32.totalorder %s649_s11, %s642_s7 }
  0x24   : > { %p646_p0 = pneg %p645_p9  ;;  %p652_p11 = por %p651_p12, %p650_p2 }
  0x26   : > { %p653_p6 = pnand %p652_p11, %p646_p0 }
  0x28   : > { %656 = shalt.err (!%p653_p6)
}
  0x29   : > { %s724_s13 = smov 256   ;;  %s725_s17 = smov 16  }
  0x2a   : > { %579 = dma.hbm_to_vmem [thread:$0]  (!%p827_p13), %s823_s12, 1024, %s831_s14, %s833_s16, %s724_s13, %s724_s13, %s725_s17  }
  0x2b   : > { %p561_p9 = scmp.ge.s32.totalorder %s721_s21, 1  ;;  %p206_p1 = scmp.lt.s32.totalorder %s721_s21, 3 }
  0x2d   : > { %p207_p3 = pnand %p561_p9, %p206_p1 }
  0x2e   : > { %s857_s23 = sand.u32 (!%p207_p3), 1, %s713_s19   ;;  %p987_p6 = scmp.ne.s32.totalorder (!%p207_p3), %s983_s29, 0 }
  0x2f   : > { %210 = sbr.rel (%p207_p3) target bundleno = 809 (0x329), region = 40  ;;  %s562_s25 = sshll.u32 (!%p207_p3), %s857_s23, 6 }
  0x30   : > { %s213_s26 = scalar_lea.sflag (!%p207_p3), [#allocation3], %s857_s23  ;;  %s216_s28 = scalar_lea.vmem (!%p207_p3), [#allocation2], %s562_s25 }
  0x34   : > { %700 = dma.done.wait (%p987_p6), %s213_s26, 1024  }
  0x35   : > { %702 = vsyncadd (%p987_p6), %s213_s26, 4294966272  ;;  %v867_v0 = vld [vmem:[%s216_s28 + $0x20] sm:$0xff]  ;;  %v869_v1 = vld [vmem:[%s216_s28 + $0x28] sm:$0xff]  ;;  %v269_v12 = vlaneseq  ;;  %v726_v18 = vmov 0   ;;  %vm366_vm0 = vcmask 130112   ;;  %vm373_vm1 = vcmask 195712  }
  0x36   : > { %v871_v2 = vld [vmem:[%s216_s28] sm:$0xff]  ;;  %v257_v3 = vadd.f32 %v869_v1, %v867_v0  ;;  %v875_v4 = vld [vmem:[%s216_s28 + $0x8] sm:$0xff]  ;;  %v877_v5 = vld [vmem:[%s216_s28 + $0x30] sm:$0xff]  ;;  %624 = vset.pattern.permute.xlu1 %v726_v18  ;;  %623 = vset.pattern.permute.xlu0 %v726_v18  ;;  %vm380_vm2 = vcmask 261312   ;;  %vm401_vm3 = vcmask 1041409   ;;  %vm404_vm4 = vcmask 254976  }
  0x37   : > { %v879_v6 = vld [vmem:[%s216_s28 + $0x38] sm:$0xff]  ;;  %v251_v7 = vadd.f32 %v875_v4, %v871_v2  ;;  %v883_v8 = vld [vmem:[%s216_s28 + $0x10] sm:$0xff]  ;;  %v891_v13 = vshrl.u32 %v269_v12, 7  ;;  %v267_v15 = vld [vmem:[%s975_s1] sm:$0x3]  ;;  %v356_v45 = vand.u32 127, %v269_v12 }
  0x38   : > { %v885_v9 = vld [vmem:[%s216_s28 + $0x18] sm:$0xff]  ;;  %258 = vadd.xlane.f32.xlu1 %v257_v3  ;;  %v260_v10 = vadd.f32 %v879_v6, %v877_v5  ;;  %s242_s10 = scalar_lea.vmem [#allocation5], %s562_s25  ;;  %s571_s13 = sshll.u32 %s781_s22, 10 }
  0x39   : > { %252 = vadd.xlane.f32.xlu0 %v251_v7  ;;  %v254_v11 = vadd.f32 %v885_v9, %v883_v8  ;;  %v271_v14 = vsub.s32 0, %v891_v13  ;;  %v290_v17 = vsub.s32 1, %v891_v13  ;;  %v361_v48 = vadd.s32 4294967288, %v356_v45  ;;  %s482_s11 = sshll.u32 %s242_s10, 4  ;;  %s929_s26 = scalar_lea.hbm %s979_s5, %s571_s13  ;;  %s924_s11 = int_to_ptr.vmem [resolvable:$true] %s482_s11 }
  0x3a   : > { %v368_v49 = vadd.s32 4294967280, %v356_v45  ;;  %v375_v50 = vadd.s32 4294967272, %v356_v45  ;;  %v359_v54 = vsub.s32 %v356_v45, %v891_v13  ;;  %s469_s22 = scalar_lea.sflag [#allocation4], %s857_s23  ;;  %s657_s28 = scalar_lea.vmem %s924_s11, 1024 }
  0x3b   : > { %v272_v16 = vrot.slane %v267_v15, %v271_v14  ;;  %v291_v19 = vrot.slane %v267_v15, %v290_v17  ;;  %v364_v53 = vsub.s32 %v361_v48, %v891_v13  ;;  %p658_p11 = scmp.ne.s32.totalorder %s924_s11, %s657_s28  ;;  %p988_p12 = scmp.ne.s32.totalorder %s984_s30, 0 }
  0x3c   : > { %261 = vadd.xlane.f32.xlu1 %v260_v10  ;;  %v371_v55 = vsub.s32 %v368_v49, %v891_v13  ;;  %v378_v56 = vsub.s32 %v375_v50, %v891_v13  ;;  %s727_s29 = smov [#allocation5]  }
  0x3d   : > { %255 = vadd.xlane.f32.xlu0 %v254_v11  ;;  %p659_p13 = pnand %p658_p11, %p988_p12  ;;  %s661_s12 = sshll.u32 %s727_s29, 4  ;;  %s662_s12 = int_to_ptr.vmem [resolvable:$false] %s661_s12 }
  0x3e   : > { %s663_s14 = scalar_lea.vmem %s662_s12, 2048  ;;  %p664_p5 = scmp.lt.s32.totalorder %s924_s11, %s662_s12 }
  0x3f   : > { %p660_p4 = pneg %p659_p13  ;;  %p665_p7 = scmp.lt.s32.totalorder %s663_s14, %s657_s28 }
  0x41   : > { %p666_p8 = por %p665_p7, %p664_p5 }
  0x43   : > { %p667_p10 = pnand %p666_p8, %p660_p4 }
  0x4d   : > { %278 = vbcast.lane.b32.xlu1 %v272_v16, 264 }
  0x51   : > { %293 = vbcast.lane.b32.xlu1 %v291_v19, 256 }
  0x53   : > { %274 = vbcast.lane.b32.xlu0 %v272_v16, 256 }
  0x55   : > { %297 = vbcast.lane.b32.xlu1 %v291_v19, 264 }
  0x57   : > { %282 = vbcast.lane.b32.xlu0 %v272_v16, 272 }
  0x59   : > { %301 = vbcast.lane.b32.xlu1 %v291_v19, 272 }
  0x5b   : > { %286 = vbcast.lane.b32.xlu0 %v272_v16, 280 }
  0x5d   : > { %305 = vbcast.lane.b32.xlu1 %v291_v19, 280 }
  0xc1   : > { %v259_v20 = vpop.xlane.xlu1 %258 }
  0xc2   : > { %v253_v21 = vpop.xlane.xlu0 %252  ;;  %v265_v33 = vmul.f32 0.00390625, %v259_v20 }
  0xc3   : > { %v263_v25 = vmul.f32 0.00390625, %v253_v21 }
  0xc5   : > { %v262_v22 = vpop.xlane.xlu1 %261 }
  0xc6   : > { %v256_v23 = vpop.xlane.xlu0 %255  ;;  %v266_v38 = vmul.f32 0.00390625, %v262_v22  ;;  %v408_v22 = vld [vmem:[%s976_s2] sm:$0x3] }
  0xc7   : > { %v264_v24 = vmul.f32 0.00390625, %v256_v23 }
  0xc9   : > { %v279_v26 = vpop.permute.xlu1 %278 }
  0xca   : > { %v316_v27 = vmul.f32 %v279_v26, %v264_v24  ;;  %v275_v28 = vpop.permute.xlu0 %274  ;;  %v411_v26 = vld [vmem:[%s977_s3] sm:$0x3] }
  0xcb   : > { %v315_v29 = vmul.f32 %v275_v28, %v263_v25 }
  0xcc   : > { %335 = vperm.xlu1 %624, %v316_v27  }
  0xcd   : > { %332 = vperm.xlu0 %623, %v315_v29   ;;  %v294_v30 = vpop.permute.xlu1 %293 }
  0xce   : > { %v319_v31 = vmul.f32 %v294_v30, %v263_v25  ;;  %v283_v32 = vpop.permute.xlu0 %282 }
  0xcf   : > { %v317_v35 = vmul.f32 %v283_v32, %v265_v33 }
  0xd0   : > { %344 = vperm.xlu1 %624, %v319_v31  }
  0xd1   : > { %v298_v34 = vpop.permute.xlu1 %297 }
  0xd2   : > { %v320_v36 = vmul.f32 %v298_v34, %v264_v24  ;;  %v287_v37 = vpop.permute.xlu0 %286 }
  0xd3   : > { %v318_v40 = vmul.f32 %v287_v37, %v266_v38 }
  0xd4   : > { %347 = vperm.xlu0 %623, %v320_v36   ;;  %338 = vperm.xlu1 %624, %v317_v35   ;;  %v425_v35 = vld [vmem:[%s978_s4] sm:$0x1] }
  0xd5   : > { %v302_v39 = vpop.permute.xlu1 %301 }
  0xd6   : > { %v321_v41 = vmul.f32 %v302_v39, %v265_v33 }
  0xd8   : > { %350 = vperm.xlu0 %623, %v321_v41   ;;  %341 = vperm.xlu1 %624, %v318_v40  }
  0xd9   : > { %v306_v42 = vpop.permute.xlu1 %305 }
  0xda   : > { %v322_v43 = vmul.f32 %v306_v42, %v266_v38 }
  0xdc   : > { %353 = vperm.xlu0 %623, %v322_v43  }
 0x147   : > { %v336_v44 = vpop.permute.xlu1 %335 }
 0x148   : > { %v333_v46 = vpop.permute.xlu0 %332  ;;  %v365_v59 = vrot.slane %v336_v44, %v364_v53 }
 0x149   : > { %v360_v60 = vrot.slane %v333_v46, %v359_v54 }
 0x14b   : > { %v345_v47 = vpop.permute.xlu1 %344  ;;  %v367_v11 = vsel %vm366_vm0, %v365_v59, %v360_v60 }
 0x14c   : > { %v385_v3 = vrot.slane %v345_v47, %v359_v54 }
 0x14f   : > { %v339_v51 = vpop.permute.xlu1 %338  ;;  %v348_v52 = vpop.permute.xlu0 %347 }
 0x150   : > { %v389_v61 = vrot.slane %v348_v52, %v364_v53  ;;  %v372_v62 = vrot.slane %v339_v51, %v371_v55 }
 0x152   : > { %v390_v12 = vsel %vm366_vm0, %v389_v61, %v385_v3  ;;  %v374_v16 = vsel %vm373_vm1, %v372_v62, %v367_v11 }
 0x153   : > { %v342_v57 = vpop.permute.xlu1 %341  ;;  %v351_v58 = vpop.permute.xlu0 %350 }
 0x154   : > { %v394_v63 = vrot.slane %v351_v58, %v371_v55  ;;  %v379_v7 = vrot.slane %v342_v57, %v378_v56 }
 0x156   : > { %v395_v17 = vsel %vm373_vm1, %v394_v63, %v390_v12  ;;  %v381_v18 = vsel %vm380_vm2, %v379_v7, %v374_v16 }
 0x157   : > { %v354_v10 = vpop.permute.xlu0 %353 }
 0x158   : > { %v399_v15 = vrot.slane %v354_v10, %v378_v56 }
 0x15a   : > { %v400_v19 = vsel %vm380_vm2, %v399_v15, %v395_v17 }
 0x15b   : > { %v402_v20 = vsel %vm401_vm3, %v400_v19, %v381_v18 }
 0x15c   : > { %v405_v21 = vsel %vm404_vm4, %v402_v20, 0.0 }
 0x15d   : > { %406 = vadd.xlane.f32.xlu1 %v405_v21 }
 0x1e6   : > { %v407_v23 = vpop.xlane.xlu1 %406 }
 0x1e7   : > { %v409_v24 = vadd.f32 %v408_v22, %v407_v23 }
 0x1e9   : > { %v410_v25 = vmax.f32 %v409_v24, 0.0 }
 0x1eb   : > { %414 = vperm.xlu0 %623, %v410_v25  }
 0x266   : > { %v415_v27 = vpop.permute.xlu0 %414 }
 0x267   : > { %v417_v28 = vmul.f32 %v415_v27, %v411_v26 }
 0x269   : > { %v418_v29 = vsel %vm404_vm4, %v417_v28, 0.0 }
 0x26a   : > { %v419_v30 = vrot.slane %v418_v29, 4 }
 0x26c   : > { %v420_v31 = vadd.f32 %v419_v30, %v418_v29 }
 0x26e   : > { %v421_v32 = vrot.slane %v420_v31, 2 }
 0x270   : > { %v422_v33 = vadd.f32 %v421_v32, %v420_v31 }
 0x272   : > { %v423_v34 = vrot.slane %v422_v33, 1 }
 0x274   : > { %v424_v36 = vadd.f32 %v423_v34, %v422_v33 }
 0x276   : > { %v426_v37 = vadd.f32 %v425_v35, %v424_v36 }
 0x278   : > { %v564_v38 = vmul.f32 -1.442695, %v426_v37 }
 0x27a   : > { %625 = vpow2.f32 %v564_v38 }
 0x287   : > { %v626_v39 = vpop.eup %625 }
 0x288   : > { %v430_v40 = vadd.f32 1.0, %v626_v39 }
 0x28a   : > { %627 = vrcp.f32 %v430_v40 }
 0x297   : > { %v628_v41 = vpop.eup %627 }
 0x298   : > { %v436_v42 = vrot.slane %v628_v41, %v271_v14 }
 0x29a   : > { %438 = vbcast.lane.b32.xlu0 %v436_v42, 256 }
 0x29e   : > { %442 = vbcast.lane.b32.xlu0 %v436_v42, 264 }
 0x2a2   : > { %446 = vbcast.lane.b32.xlu0 %v436_v42, 272 }
 0x2a6   : > { %450 = vbcast.lane.b32.xlu0 %v436_v42, 280 }
 0x30c   : > { %v439_v43 = vpop.permute.xlu0 %438 }
 0x30d   : > { %v452_v44 = vmul.f32 %v439_v43, %v871_v2  ;;  %v453_v45 = vmul.f32 %v439_v43, %v875_v4 }
 0x30f   : > { %460 = vst [vmem:[%s242_s10] sm:$0xff] %v452_v44  ;;  %461 = vst [vmem:[%s242_s10 + $0x8] sm:$0xff] %v453_v45 }
 0x310   : > { %v443_v46 = vpop.permute.xlu0 %442 }
 0x311   : > { %v454_v47 = vmul.f32 %v443_v46, %v883_v8  ;;  %v455_v13 = vmul.f32 %v443_v46, %v885_v9 }
 0x313   : > { %462 = vst [vmem:[%s242_s10 + $0x10] sm:$0xff] %v454_v47  ;;  %463 = vst [vmem:[%s242_s10 + $0x18] sm:$0xff] %v455_v13 }
 0x314   : > { %v447_v14 = vpop.permute.xlu0 %446 }
 0x315   : > { %v456_v48 = vmul.f32 %v447_v14, %v867_v0  ;;  %v457_v2 = vmul.f32 %v447_v14, %v869_v1 }
 0x317   : > { %464 = vst [vmem:[%s242_s10 + $0x20] sm:$0xff] %v456_v48  ;;  %465 = vst [vmem:[%s242_s10 + $0x28] sm:$0xff] %v457_v2 }
 0x318   : > { %v451_v4 = vpop.permute.xlu0 %450 }
 0x319   : > { %v458_v8 = vmul.f32 %v451_v4, %v877_v5  ;;  %v459_v0 = vmul.f32 %v451_v4, %v879_v6 }
 0x31b   : > { %466 = vst [vmem:[%s242_s10 + $0x30] sm:$0xff] %v458_v8  ;;  %467 = vst [vmem:[%s242_s10 + $0x38] sm:$0xff] %v459_v0 }
 0x31c   : > { %670 = shalt.err (!%p667_p10)
}
 0x31d   : > { %s671_s15 = scalar_lea.hbm %s929_s26, 1024  ;;  %s675_s7 = scalar_lea.hbm %s979_s5, 2048 }
 0x31e   : > { %p672_p0 = scmp.ne.s32.totalorder %s929_s26, %s671_s15  ;;  %p676_p1 = scmp.lt.s32.totalorder %s929_s26, %s979_s5 }
 0x31f   : > { %p677_p3 = scmp.lt.s32.totalorder %s675_s7, %s671_s15 }
 0x320   : > { %p673_p2 = pnand %p672_p0, %p988_p12 }
 0x321   : > { %p678_p6 = por %p677_p3, %p676_p1 }
 0x322   : > { %p674_p9 = pneg %p673_p2 }
 0x324   : > { %p679_p11 = pnand %p678_p6, %p674_p9 }
 0x326   : > { %682 = shalt.err (!%p679_p11)
}
 0x327   : > { %s728_s13 = smov 256   ;;  %s729_s17 = smov 16  }
 0x328   : > { %574 = dma.vmem_to_hbm [thread:$0]  (%p988_p12), %s924_s11, 1024, %s929_s26, %s469_s22, %s728_s13, %s728_s13, %s729_s17  }
 0x329 PF: > { %s497_s25 = sand.u32 1, %s709_s18   ;;  %p989_p13 = scmp.ne.s32.totalorder %s985_s6, 0 }
 0x32a   : > { %p990_p4 = scmp.ge.s32.totalorder %s721_s21, 2  ;;  %s498_s28 = scalar_lea.sflag [#allocation4], %s497_s25 }
 0x32c   : > { %p581_p5 = pnand %p990_p4, %p989_p13 }
 0x32e   : > { %p582_p7 = pneg %p581_p5 }
 0x330   : > { %704 = dma.done.wait (%p582_p7), %s498_s28, 1024  }
 0x331   : > { %706 = vsyncadd (%p582_p7), %s498_s28, 4294966272  ;;  %p18_p8 = scmp.ge.s32.totalorder %s785_s24, 4   ;;  %s991_s18 = smov %s713_s19 }
 0x332   : > { %s992_s19 = smov %s717_s20  ;;  %s993_s20 = smov %s797_s27 }
 0x333   : > { %s994_s21 = smov %s785_s24  ;;  %20 = sbr.rel (!%p18_p8) target bundleno = 5 (0x5), region = 85 }
 0x338   :  { %503 = vsyncpa [#allocation3], 1 }
 0x339   :  { %505 = vsyncpa [#allocation3 + $0x1], 1 }
 0x33a   :  { %506 = vsyncpa [#allocation4], 1 }
 0x33b   :  { %508 = vsyncpa [#allocation4 + $0x1], 1 }

</bundles_post_ra>
